<compile_context>
chip_gen: v6e
topology: v6e:2x2x1
jax: 0.10.0
libtpu: 0.0.40
codegen_flags: <defaults>
</compile_context>

<pallas_src>
import math
from functools import partial

import jax
import jax.numpy as jnp
from jax import lax
from jax.experimental import pallas as pl
from jax.experimental.pallas import tpu as pltpu

DROPOUT_P = 0.8                      # torch.nn.functional.dropout(p=0.8, training=True)
KEEP_PROB = 1.0 - DROPOUT_P
# keep an element iff hash_bits (uniform u32) < KEEP_THRESH  => P(keep) = KEEP_PROB
KEEP_THRESH = min(int(round(KEEP_PROB * 2.0 ** 32)), 2 ** 32 - 1)


def _hash_u32(x):
    """splitmix32-style finalizer: cheap, portable counter-based PRNG (u32 -> u32)."""
    x = (x ^ (x >> 16)) * jnp.uint32(0x7FEB352D)
    x = (x ^ (x >> 15)) * jnp.uint32(0x846CA68B)
    x = x ^ (x >> 16)
    return x


def _attn_kernel(q_ref, k_ref, v_ref, x4_ref, o_ref, *,
                 scale, seed, heads_per_block, seq_len):
    q = q_ref[...]          # (hb, S, D)
    k = k_ref[...]          # (hb, S, D)
    v = v_ref[...]          # (hb, S, D)
    x4 = x4_ref[...]        # (hb, S, D)

    # scores = (q @ k^T) / inv_scale_factor, expressed as a contraction over the
    # last dims (no explicit k.T -> no XLU relayout) plus one constant multiply.
    s = jnp.einsum("bqd,bkd->bqk", q, k,
                   preferred_element_type=jnp.float32) * jnp.float32(scale)

    # numerically-stable softmax; the dropout 1/keep_prob rescale is folded into
    # the tiny (hb, S, 1)-shaped normalization factor (saves a full (S,S) pass).
    m = jnp.max(s, axis=-1, keepdims=True)
    e = jnp.exp(s - m)
    denom = jnp.sum(e, axis=-1, keepdims=True)
    inv = jnp.float32(1.0 / KEEP_PROB) / denom

    # dropout(p=0.8): counter-based hash PRNG, thresholded in integer space
    # (no shift/convert/float-mul chain, no TPU-only prng primitives).
    b_i = lax.broadcasted_iota(jnp.int32, s.shape, 0)
    q_i = lax.broadcasted_iota(jnp.int32, s.shape, 1)
    k_i = lax.broadcasted_iota(jnp.int32, s.shape, 2)
    head = pl.program_id(0) * heads_per_block + b_i
    lin = (head * seq_len + q_i) * seq_len + k_i
    bits = _hash_u32(lin.astype(jnp.uint32) + jnp.uint32(seed))
    keep = bits < jnp.uint32(KEEP_THRESH)

    p = jnp.where(keep, e, jnp.float32(0.0)) * inv          # (hb, S, S)

    out = jnp.einsum("bqk,bkd->bqd", p, v,
                     preferred_element_type=jnp.float32) + x4
    # TODO(synk): output last dim is D=64 (<128 lanes) -> masked stores; lane-dense
    # (S, H*D) packing would need wrapper transposes that cost more than they save
    # at this size.
    o_ref[...] = out.astype(o_ref.dtype)


def model_forward(x1, x2, x3, x4, seed=42):
    """Pallas implementation of Model.forward (x1=query, x2=key, x3=value, +x4)."""
    B, H, S, D = x1.shape
    BH = B * H
    inv_scale_factor = 1.0 / math.sqrt(D)
    scale = 1.0 / inv_scale_factor        # module does qk.div(inv_scale_factor)

    # 2 parallel grid steps of BH//2 heads each when possible: both TensorCores
    # on v7x, only one extra ~0.35us step on single-TC v5e/v6e. Otherwise fully
    # collapse to a single step.
    heads_per_block = BH // 2 if (BH % 2 == 0 and BH >= 2) else BH
    n_blocks = BH // heads_per_block

    q = x1.reshape(BH, S, D)
    k = x2.reshape(BH, S, D)
    v = x3.reshape(BH, S, D)
    r = x4.reshape(BH, S, D)

    spec = pl.BlockSpec((heads_per_block, S, D), lambda i: (i, 0, 0))
    kernel = partial(_attn_kernel, scale=scale, seed=seed,
                     heads_per_block=heads_per_block, seq_len=S)

    out = pl.pallas_call(
        kernel,
        out_shape=jax.ShapeDtypeStruct((BH, S, D), jnp.float32),
        grid=(n_blocks,),
        in_specs=[spec, spec, spec, spec],
        out_specs=spec,
        compiler_params=pltpu.CompilerParams(
            dimension_semantics=("parallel",),
        ),
    )(q, k, v, r)

    return out.reshape(B, H, S, D)


def _reference(x1, x2, x3, x4, seed):
    """Pure-JAX reference using the same deterministic dropout mask."""
    B, H, S, D = x1.shape
    s = jnp.einsum("bhqd,bhkd->bhqk", x1, x2) * math.sqrt(D)
    p = jax.nn.softmax(s, axis=-1)
    head = jnp.arange(B * H, dtype=jnp.int32).reshape(B, H, 1, 1)
    q_i = jnp.arange(S, dtype=jnp.int32).reshape(1, 1, S, 1)
    k_i = jnp.arange(S, dtype=jnp.int32).reshape(1, 1, 1, S)
    lin = (head * S + q_i) * S + k_i
    bits = _hash_u32(lin.astype(jnp.uint32) + jnp.uint32(seed))
    keep = bits < jnp.uint32(KEEP_THRESH)
    p = jnp.where(keep, p * (1.0 / KEEP_PROB), 0.0)
    return jnp.einsum("bhqk,bhkd->bhqd", p, x3) + x4


if __name__ == "__main__":
    key = jax.random.PRNGKey(0)
    k1, k2, k3, k4 = jax.random.split(key, 4)
    shape = (1, 4, 30, 64)
    x1 = jax.random.normal(k1, shape, dtype=jnp.float32)
    x2 = jax.random.normal(k2, shape, dtype=jnp.float32)
    x3 = jax.random.normal(k3, shape, dtype=jnp.float32)
    x4 = jax.random.normal(k4, shape, dtype=jnp.float32)

    out = model_forward(x1, x2, x3, x4, seed=42)
    jax.block_until_ready(out)
    assert out.shape == shape and out.dtype == jnp.float32

    ref = _reference(x1, x2, x3, x4, seed=42)
    assert jnp.allclose(out, ref, rtol=1e-3, atol=1e-3), float(jnp.max(jnp.abs(out - ref)))

    print("KERNEL_OK")
</pallas_src>

<mosaic_0001>
module attributes {stable_mosaic.version = 11 : i64} {
  func.func @_attn_kernel(%arg0: i32, %arg1: memref<2x30x64xf32, #tpu.memory_space<vmem>>, %arg2: memref<2x30x64xf32, #tpu.memory_space<vmem>>, %arg3: memref<2x30x64xf32, #tpu.memory_space<vmem>>, %arg4: memref<2x30x64xf32, #tpu.memory_space<vmem>>, %arg5: memref<2x30x64xf32, #tpu.memory_space<vmem>>) attributes {dimension_semantics = [#tpu.dimension_semantics<parallel>], iteration_bounds = array<i64: 2>, scalar_prefetch = 0 : i64, scratch_operands = 0 : i64, tpu.core_type = #tpu.core_type<tc>, window_params = [{transform_indices = @transform_0, window_bounds = array<i64: 2, 30, 64>}, {transform_indices = @transform_1, window_bounds = array<i64: 2, 30, 64>}, {transform_indices = @transform_2, window_bounds = array<i64: 2, 30, 64>}, {transform_indices = @transform_3, window_bounds = array<i64: 2, 30, 64>}, {transform_indices = @transform_4, window_bounds = array<i64: 2, 30, 64>}]} {
    %c0 = arith.constant 0 : index
    %c0_0 = arith.constant 0 : index
    %c0_1 = arith.constant 0 : index
    %0 = vector.load %arg1[%c0, %c0_0, %c0_1] : memref<2x30x64xf32, #tpu.memory_space<vmem>>, vector<2x30x64xf32>
    %c0_2 = arith.constant 0 : index
    %c0_3 = arith.constant 0 : index
    %c0_4 = arith.constant 0 : index
    %1 = vector.load %arg2[%c0_2, %c0_3, %c0_4] : memref<2x30x64xf32, #tpu.memory_space<vmem>>, vector<2x30x64xf32>
    %c0_5 = arith.constant 0 : index
    %c0_6 = arith.constant 0 : index
    %c0_7 = arith.constant 0 : index
    %2 = vector.load %arg3[%c0_5, %c0_6, %c0_7] : memref<2x30x64xf32, #tpu.memory_space<vmem>>, vector<2x30x64xf32>
    %c0_8 = arith.constant 0 : index
    %c0_9 = arith.constant 0 : index
    %c0_10 = arith.constant 0 : index
    %3 = vector.load %arg4[%c0_8, %c0_9, %c0_10] : memref<2x30x64xf32, #tpu.memory_space<vmem>>, vector<2x30x64xf32>
    "tpu.trace_start"() <{level = 10 : i32, message = "bqd,bkd->bqk"}> : () -> ()
    %cst = arith.constant dense<0.000000e+00> : vector<2x30x30xf32>
    %4 = tpu.matmul %0, %1, %cst {dimension_numbers = #tpu.dot_dimension_numbers<[2], [2], [1], [1], [0, 0, 0, 1, 1, 1], [0], [0]>} : vector<2x30x64xf32>, vector<2x30x64xf32>, vector<2x30x30xf32> -> vector<2x30x30xf32>
    "tpu.trace_stop"() : () -> ()
    %cst_11 = arith.constant 8.000000e+00 : f32
    %5 = vector.broadcast %cst_11 : f32 to vector<2x30x30xf32>
    %6 = arith.mulf %4, %5 : vector<2x30x30xf32>
    %cst_12 = arith.constant dense<0xFF800000> : vector<2x30xf32>
    %7 = vector.multi_reduction <maximumf>, %6, %cst_12 [2] : vector<2x30x30xf32> to vector<2x30xf32>
    %8 = vector.shape_cast %7 : vector<2x30xf32> to vector<2x30x1xf32>
    %9 = vector.broadcast %8 : vector<2x30x1xf32> to vector<2x30x30xf32>
    %10 = arith.subf %6, %9 : vector<2x30x30xf32>
    %11 = math.exp %10 : vector<2x30x30xf32>
    %cst_13 = arith.constant dense<0.000000e+00> : vector<2x30xf32>
    %12 = vector.multi_reduction <add>, %11, %cst_13 [2] : vector<2x30x30xf32> to vector<2x30xf32>
    %13 = vector.shape_cast %12 : vector<2x30xf32> to vector<2x30x1xf32>
    %cst_14 = arith.constant 5.000000e+00 : f32
    %14 = vector.broadcast %cst_14 : f32 to vector<2x30x1xf32>
    %15 = arith.divf %14, %13 : vector<2x30x1xf32>
    %16 = tpu.iota {dimensions = array<i32: 0>} : vector<2x30x30xi32>
    %17 = tpu.iota {dimensions = array<i32: 1>} : vector<2x30x30xi32>
    %18 = tpu.iota {dimensions = array<i32: 2>} : vector<2x30x30xi32>
    %c2_i32 = arith.constant 2 : i32
    %19 = arith.muli %arg0, %c2_i32 : i32
    %20 = vector.broadcast %19 : i32 to vector<2x30x30xi32>
    %21 = arith.addi %20, %16 : vector<2x30x30xi32>
    %c30_i32 = arith.constant 30 : i32
    %22 = vector.broadcast %c30_i32 : i32 to vector<2x30x30xi32>
    %23 = arith.muli %21, %22 : vector<2x30x30xi32>
    %24 = arith.addi %23, %17 : vector<2x30x30xi32>
    %c30_i32_15 = arith.constant 30 : i32
    %25 = vector.broadcast %c30_i32_15 : i32 to vector<2x30x30xi32>
    %26 = arith.muli %24, %25 : vector<2x30x30xi32>
    %27 = arith.addi %26, %18 : vector<2x30x30xi32>
    %c42_i32 = arith.constant 42 : i32
    %28 = vector.broadcast %c42_i32 : i32 to vector<2x30x30xi32>
    %29 = arith.addi %27, %28 : vector<2x30x30xi32>
    %c16_i32 = arith.constant 16 : i32
    %30 = vector.broadcast %c16_i32 : i32 to vector<2x30x30xi32>
    %31 = arith.shrui %29, %30 : vector<2x30x30xi32>
    %32 = arith.xori %29, %31 : vector<2x30x30xi32>
    %c2146121005_i32 = arith.constant 2146121005 : i32
    %33 = vector.broadcast %c2146121005_i32 : i32 to vector<2x30x30xi32>
    %34 = arith.muli %32, %33 : vector<2x30x30xi32>
    %c15_i32 = arith.constant 15 : i32
    %35 = vector.broadcast %c15_i32 : i32 to vector<2x30x30xi32>
    %36 = arith.shrui %34, %35 : vector<2x30x30xi32>
    %37 = arith.xori %34, %36 : vector<2x30x30xi32>
    %c-2073254261_i32 = arith.constant -2073254261 : i32
    %38 = vector.broadcast %c-2073254261_i32 : i32 to vector<2x30x30xi32>
    %39 = arith.muli %37, %38 : vector<2x30x30xi32>
    %c16_i32_16 = arith.constant 16 : i32
    %40 = vector.broadcast %c16_i32_16 : i32 to vector<2x30x30xi32>
    %41 = arith.shrui %39, %40 : vector<2x30x30xi32>
    %42 = arith.xori %39, %41 : vector<2x30x30xi32>
    %c858993459_i32 = arith.constant 858993459 : i32
    %43 = vector.broadcast %c858993459_i32 : i32 to vector<2x30x30xi32>
    %44 = arith.cmpi ult, %42, %43 : vector<2x30x30xi32>
    %cst_17 = arith.constant 0.000000e+00 : f32
    %45 = vector.broadcast %cst_17 : f32 to vector<2x30x30xf32>
    %46 = arith.select %44, %11, %45 : vector<2x30x30xi1>, vector<2x30x30xf32>
    %47 = vector.broadcast %15 : vector<2x30x1xf32> to vector<2x30x30xf32>
    %48 = arith.mulf %46, %47 : vector<2x30x30xf32>
    "tpu.trace_start"() <{level = 10 : i32, message = "bqk,bkd->bqd"}> : () -> ()
    %cst_18 = arith.constant dense<0.000000e+00> : vector<2x30x64xf32>
    %49 = tpu.matmul %48, %2, %cst_18 {dimension_numbers = #tpu.dot_dimension_numbers<[2], [1], [1], [2], [0, 0, 0, 1, 1, 2], [0], [0]>} : vector<2x30x30xf32>, vector<2x30x64xf32>, vector<2x30x64xf32> -> vector<2x30x64xf32>
    "tpu.trace_stop"() : () -> ()
    %50 = arith.addf %49, %3 : vector<2x30x64xf32>
    %c0_19 = arith.constant 0 : index
    %c0_20 = arith.constant 0 : index
    %c0_21 = arith.constant 0 : index
    %51 = vector.load %arg5[%c0_19, %c0_20, %c0_21] : memref<2x30x64xf32, #tpu.memory_space<vmem>>, vector<2x30x64xf32>
    tpu.vector_store %arg5[%c0_19, %c0_20, %c0_21], %50 {strides = array<i32>} : memref<2x30x64xf32, #tpu.memory_space<vmem>>, vector<2x30x64xf32>,
    return
  }
  func.func @transform_0(%arg0: i32) -> (i32, i32, i32) {
    %c0_i32 = arith.constant 0 : i32
    %c0_i32_0 = arith.constant 0 : i32
    %c0_i32_1 = arith.constant 0 : i32
    return %arg0, %c0_i32, %c0_i32_0 : i32, i32, i32
  }
  func.func @transform_1(%arg0: i32) -> (i32, i32, i32) {
    %c0_i32 = arith.constant 0 : i32
    %c0_i32_0 = arith.constant 0 : i32
    %c0_i32_1 = arith.constant 0 : i32
    return %arg0, %c0_i32, %c0_i32_0 : i32, i32, i32
  }
  func.func @transform_2(%arg0: i32) -> (i32, i32, i32) {
    %c0_i32 = arith.constant 0 : i32
    %c0_i32_0 = arith.constant 0 : i32
    %c0_i32_1 = arith.constant 0 : i32
    return %arg0, %c0_i32, %c0_i32_0 : i32, i32, i32
  }
  func.func @transform_3(%arg0: i32) -> (i32, i32, i32) {
    %c0_i32 = arith.constant 0 : i32
    %c0_i32_0 = arith.constant 0 : i32
    %c0_i32_1 = arith.constant 0 : i32
    return %arg0, %c0_i32, %c0_i32_0 : i32, i32, i32
  }
  func.func @transform_4(%arg0: i32) -> (i32, i32, i32) {
    %c0_i32 = arith.constant 0 : i32
    %c0_i32_0 = arith.constant 0 : i32
    %c0_i32_1 = arith.constant 0 : i32
    return %arg0, %c0_i32, %c0_i32_0 : i32, i32, i32
  }
}

</mosaic_0001>

<bundles_post_ra>
// kernel: tpu_custom_call.1
= control target key start
LH: loop header
LB: loop body
LE: loop exit
PB: predicated region body
PF: predicated region fallthrough
CT: control target
= control target key end

     0   :  { %s1281_s15 = smov 0   ;;  %s1425_s0 = inlined_call_operand.vmem [shape: f32[4,30,64], index: 0, kind: input, shape index: {}]   ;;  %s1426_s1 = inlined_call_operand.vmem [shape: f32[4,30,64], index: 1, kind: input, shape index: {}]   ;;  %s1427_s2 = inlined_call_operand.vmem [shape: f32[4,30,64], index: 2, kind: input, shape index: {}]   ;;  %s1428_s3 = inlined_call_operand.vmem [shape: f32[4,30,64], index: 3, kind: input, shape index: {}]   ;;  %s1429_s4 = inlined_call_operand.vmem [shape: f32[4,30,64], index: 4, kind: output, shape index: {}]  }
   0x1 LB: > { %s1066_s16 = sadd.s32 4294967295, %s1254_s15   ;;  %p1070_p0 = scmp.ge.s32.totalorder %s1254_s15, 1  ;;  %s1254_s15 = sphi %s1281_s15, %s14_s15  }
   0x2   : > { %p200_p1 = scmp.lt.s32.totalorder %s1254_s15, 3 }
   0x4   : > { %p201_p2 = pnand %p1070_p0, %p200_p1 }
   0x5   : > { %s1289_s17 = sshll.u32 (!%p201_p2), %s1066_s16, 1 }
   0x6   : > { %204 = sbr.rel (%p201_p2) target bundleno = 756 (0x2f4), region = 36  ;;  %p247_p3 = scmp.lt.s32.totalorder (!%p201_p2), %s1289_s17, 3 }
   0xb   : > { %s248_s18 = scalar_select %p247_p3, %s1289_s17, 3  ;;  %vm313_vm0 = vcmask 523264   ;;  %vm540_vm1 = vcmask 244736   ;;  %vm550_vm2 = vcmask 242688   ;;  %vm774_vm3 = vcmask 1045504  }
   0xc   : > { %vm966_vm12 = vcmask 521216  }
   0xd   : > { %s1293_s19 = sshll.u32 %s248_s18, 5 }
   0xe   : > { %s258_s22 = scalar_lea.vmem %s1426_s1, %s1293_s19  ;;  %s1303_s25 = scalar_lea.vmem %s1425_s0, %s1293_s19 }
   0xf   : > { %v292_v0 = vld [vmem:[%s258_s22 + $0x18] sm:$0x3f]  ;;  %v291_v2 = vld [vmem:[%s258_s22 + $0x10] sm:$0xff]  ;;  %v281_v4 = vld [vmem:[%s1303_s25] sm:$0xff]  ;;  %s265_s28 = scalar_lea.vmem %s1427_s2, %s1293_s19  ;;  %s272_s5 = scalar_lea.vmem %s1428_s3, %s1293_s19 }
  0x10   : > { %v296_v1 = vld [vmem:[%s258_s22 + $0x38] sm:$0x3f]  ;;  %1152 = vmatprep.subr.msk.mxu0 %vm313_vm0, %v292_v0  ;;  %v295_v3 = vld [vmem:[%s258_s22 + $0x30] sm:$0xff]  ;;  %v285_v5 = vld [vmem:[%s1303_s25 + $0x20] sm:$0xff]  ;;  %1160 = vmatprep.mubr.msk.f32.mxu0 %vm313_vm0, %v281_v4  ;;  %s1406_s8 = scalar_lea.vmem %s1429_s4, %s1293_s19 }
  0x11   : > { %1166 = vmatprep.subr.msk.mxu1 %vm313_vm0, %v296_v1  ;;  %1153 = vmatpush3.xpose.msk.msra.mxu0 %vm313_vm0, %v292_v0  ;;  %v290_v6 = vld [vmem:[%s258_s22 + $0x8] sm:$0xff]  ;;  %v289_v8 = vld [vmem:[%s258_s22] sm:$0xff]  ;;  %v283_v12 = vld [vmem:[%s1303_s25 + $0x10] sm:$0xff] }
  0x12   : > { %1167 = vmatpush3.xpose.msk.msra.mxu1 %vm313_vm0, %v296_v1  ;;  %1154 = vmatprep.subr.msk.mxu0 %vm313_vm0, %v291_v2  ;;  %v294_v7 = vld [vmem:[%s258_s22 + $0x28] sm:$0xff]  ;;  %v293_v9 = vld [vmem:[%s258_s22 + $0x20] sm:$0xff]  ;;  %v287_v13 = vld [vmem:[%s1303_s25 + $0x30] sm:$0xff] }
  0x13   : > { %1168 = vmatprep.subr.msk.mxu1 %vm313_vm0, %v295_v3  ;;  %1174 = vmatprep.mubr.msk.f32.mxu1 %vm313_vm0, %v285_v5  ;;  %v282_v10 = vld [vmem:[%s1303_s25 + $0x8] sm:$0xff]  ;;  %v284_v14 = vld [vmem:[%s1303_s25 + $0x18] sm:$0x3f] }
  0x14   : > { %v286_v11 = vld [vmem:[%s1303_s25 + $0x28] sm:$0xff]  ;;  %v288_v15 = vld [vmem:[%s1303_s25 + $0x38] sm:$0x3f] }
  0x15   : > { %1155 = vmatpush3.xpose.msk.msra.mxu0 %vm313_vm0, %v291_v2 }
  0x16   : > { %1169 = vmatpush3.xpose.msk.msra.mxu1 %vm313_vm0, %v295_v3  ;;  %1156 = vmatprep.subr.msk.mxu0 %vm313_vm0, %v290_v6 }
  0x17   : > { %1170 = vmatprep.subr.msk.mxu1 %vm313_vm0, %v294_v7 }
  0x19   : > { %1157 = vmatpush3.xpose.msk.msra.mxu0 %vm313_vm0, %v290_v6 }
  0x1a   : > { %1171 = vmatpush3.xpose.msk.msra.mxu1 %vm313_vm0, %v294_v7  ;;  %1158 = vmatprep.subr.msk.mxu0 %vm313_vm0, %v289_v8 }
  0x1b   : > { %1172 = vmatprep.subr.msk.mxu1 %vm313_vm0, %v293_v9 }
  0x1d   : > { %1159 = vmatpush3.xpose.msk.msra.mxu0 %vm313_vm0, %v289_v8 }
  0x1e   : > { %1173 = vmatpush3.xpose.msk.msra.mxu1 %vm313_vm0, %v293_v9 }
  0x20   : > { %1161 = vmatmul.mubr.msk.f32.vlgmr.msra.gmra.mxu0 %vm313_vm0, %v282_v10 }
  0x21   : > { %1175 = vmatmul.mubr.msk.f32.vlgmr.msra.gmra.mxu1 %vm313_vm0, %v286_v11  ;;  %1163 = vmatprep.mubr.msk.f32.mxu0 %vm313_vm0, %v283_v12 }
  0x22   : > { %1177 = vmatprep.mubr.msk.f32.mxu1 %vm313_vm0, %v287_v13 }
  0x24   : > { %1164 = vmatmul.mubr.msk.f32.gmra.mxu0 %vm313_vm0, %v284_v14 }
  0x25   : > { %1178 = vmatmul.mubr.msk.f32.gmra.mxu1 %vm313_vm0, %v288_v15 }
  0xe0   : > { %v1162_v16 = vpop.f32.mrf.mxu0 }
  0xe1   : > { %v1176_v17 = vpop.f32.mrf.mxu1  ;;  %v533_v18 = vmul.f32 8.0, %v1162_v16  ;;  %v300_v16 = vld [vmem:[%s265_s28 + $0x18] sm:$0x3f] }
  0xe2   : > { %v537_v19 = vmul.f32 8.0, %v1176_v17  ;;  %v404_v20 = vpop.f32.mrf.mxu0  ;;  %1180 = vmatprep.subr.msk.mxu0 %vm774_vm3, %v300_v16  ;;  %v299_v17 = vld [vmem:[%s265_s28 + $0x10] sm:$0xff] }
  0xe3   : > { %v513_v21 = vpop.f32.mrf.mxu1  ;;  %v532_v22 = vmul.f32 8.0, %v404_v20  ;;  %v544_v25 = vsel %vm540_vm1, %v533_v18, -inf  ;;  %1181 = vmatpush3.msk.msra.mxu0 %vm774_vm3, %v300_v16  ;;  %v297_v20 = vld [vmem:[%s265_s28] sm:$0xff] }
  0xe4   : > { %v557_v23 = vsel %vm540_vm1, %v537_v19, -inf  ;;  %v536_v24 = vmul.f32 8.0, %v513_v21  ;;  %545 = vmax.xlane.f32.xlu0 %v544_v25  ;;  %v1165_v26 = vpop.f32.mrf.mxu0  ;;  %1182 = vmatprep.subr.mxu0 %v299_v17  ;;  %v303_v21 = vld [vmem:[%s265_s28 + $0x30] sm:$0xff] }
  0xe5   : > { %558 = vmax.xlane.f32.xlu1 %v557_v23  ;;  %v1179_v27 = vpop.f32.mrf.mxu1  ;;  %v535_v28 = vmul.f32 8.0, %v1165_v26  ;;  %v541_v32 = vsel %vm540_vm1, %v532_v22, -inf  ;;  %1183 = vmatpush3.msra.mxu0 %v299_v17  ;;  %v301_v23 = vld [vmem:[%s265_s28 + $0x20] sm:$0xff]  ;;  %v638_v26 = vstv %s1289_s17 }
  0xe6   : > { %v554_v29 = vsel %vm540_vm1, %v536_v24, -inf  ;;  %v414_v30 = vpop.f32.mrf.mxu0  ;;  %v539_v34 = vmul.f32 8.0, %v1179_v27 }
  0xe7   : > { %v523_v31 = vpop.f32.mrf.mxu1  ;;  %v534_v33 = vmul.f32 8.0, %v414_v30  ;;  %v551_v36 = vsel %vm550_vm2, %v535_v28, -inf }
  0xe8   : > { %542 = vmax.xlane.f32.xlu0 %v541_v32  ;;  %v538_v35 = vmul.f32 8.0, %v523_v31  ;;  %v563_v38 = vsel %vm550_vm2, %v539_v34, -inf }
  0xe9   : > { %555 = vmax.xlane.f32.xlu1 %v554_v29  ;;  %v547_v37 = vsel %vm540_vm1, %v534_v33, -inf  ;;  %v639_v29 = vadd.s32 1, %v638_v26 }
  0xea   : > { %v560_v39 = vsel %vm540_vm1, %v538_v35, -inf }
  0xeb   : > { %v641_v32 = vmul.u32 30, %v639_v29 }
  0xec   : > { %548 = vmax.xlane.f32.xlu0 %v547_v37 }
  0xed   : > { %552 = vmax.xlane.f32.xlu1 %v551_v36 }
  0xf0   : > { %561 = vmax.xlane.f32.xlu0 %v560_v39 }
  0xf1   : > { %564 = vmax.xlane.f32.xlu1 %v563_v38 }
 0x16d   : > { %v546_v41 = vpop.xlane.xlu0 %545 }
 0x16e   : > { %v559_v40 = vpop.xlane.xlu1 %558  ;;  %v567_v43 = vsub.f32 %v533_v18, %v546_v41  ;;  %v298_v18 = vld [vmem:[%s265_s28 + $0x8] sm:$0xff] }
 0x16f   : > { %v571_v42 = vsub.f32 %v537_v19, %v559_v40  ;;  %v304_v19 = vld [vmem:[%s265_s28 + $0x38] sm:$0x3f]  ;;  %1184 = vmatprep.subr.mxu0 %v298_v18 }
 0x170   : > { %v576_v44 = vmul.f32 1.442695, %v567_v43  ;;  %1194 = vmatprep.subr.msk.mxu1 %vm774_vm3, %v304_v19  ;;  %1185 = vmatpush3.msra.mxu0 %v298_v18 }
 0x171   : > { %v584_v45 = vmul.f32 1.442695, %v571_v42  ;;  %v543_v47 = vpop.xlane.xlu0 %542  ;;  %1195 = vmatpush3.msk.msra.mxu1 %vm774_vm3, %v304_v19  ;;  %1186 = vmatprep.subr.mxu0 %v297_v20 }
 0x172   : > { %v556_v46 = vpop.xlane.xlu1 %555  ;;  %v566_v49 = vsub.f32 %v532_v22, %v543_v47  ;;  %1216 = vpow2.f32 %v576_v44  ;;  %1196 = vmatprep.subr.mxu1 %v303_v21  ;;  %1187 = vmatpush3.msra.mxu0 %v297_v20  ;;  %v302_v22 = vld [vmem:[%s265_s28 + $0x28] sm:$0xff] }
 0x173   : > { %v570_v48 = vsub.f32 %v536_v24, %v556_v46  ;;  %1218 = vpow2.f32 %v584_v45  ;;  %1197 = vmatpush3.msra.mxu1 %v303_v21  ;;  %v630_v24 = vlaneseq }
 0x174   : > { %v574_v50 = vmul.f32 1.442695, %v566_v49  ;;  %1198 = vmatprep.subr.mxu1 %v302_v22 }
 0x175   : > { %v582_v51 = vmul.f32 1.442695, %v570_v48  ;;  %v549_v53 = vpop.xlane.xlu0 %548  ;;  %1199 = vmatpush3.msra.mxu1 %v302_v22  ;;  %v631_v25 = vshrl.u32 %v630_v24, 7  ;;  %v636_v36 = vand.u32 127, %v630_v24 }
 0x176   : > { %v553_v52 = vpop.xlane.xlu1 %552  ;;  %v568_v55 = vsub.f32 %v534_v33, %v549_v53  ;;  %1220 = vpow2.f32 %v574_v50  ;;  %1200 = vmatprep.subr.mxu1 %v301_v23 }
 0x177   : > { %v569_v54 = vsub.f32 %v535_v28, %v553_v52  ;;  %1222 = vpow2.f32 %v582_v51  ;;  %1201 = vmatpush3.msra.mxu1 %v301_v23  ;;  %v632_v27 = vadd.s32 8, %v631_v25  ;;  %v640_v28 = vmul.u32 30, %v638_v26 }
 0x178   : > { %v578_v57 = vmul.f32 1.442695, %v568_v55  ;;  %v646_v33 = vadd.s32 %v641_v32, %v631_v25  ;;  %v634_v39 = vadd.s32 24, %v631_v25 }
 0x179   : > { %v580_v56 = vmul.f32 1.442695, %v569_v54  ;;  %v562_v59 = vpop.xlane.xlu0 %561  ;;  %v642_v30 = vadd.s32 %v640_v28, %v631_v25  ;;  %v643_v31 = vadd.s32 %v640_v28, %v632_v27  ;;  %v647_v38 = vadd.s32 %v641_v32, %v632_v27 }
 0x17a   : > { %v565_v58 = vpop.xlane.xlu1 %564  ;;  %v572_v61 = vsub.f32 %v538_v35, %v562_v59  ;;  %v633_v35 = vadd.s32 16, %v631_v25  ;;  %v654_v40 = vmul.u32 30, %v646_v33  ;;  %v645_v45 = vadd.s32 %v640_v28, %v634_v39 }
 0x17b   : > { %1224 = vpow2.f32 %v580_v56  ;;  %v573_v60 = vsub.f32 %v539_v34, %v565_v58  ;;  %v650_v34 = vmul.u32 30, %v642_v30  ;;  %v651_v37 = vmul.u32 30, %v643_v31 }
 0x17c   : > { %1226 = vpow2.f32 %v578_v57  ;;  %v586_v63 = vmul.f32 1.442695, %v572_v61  ;;  %v644_v42 = vadd.s32 %v640_v28, %v633_v35  ;;  %v655_v44 = vmul.u32 30, %v647_v38 }
 0x17d   : > { %v588_v62 = vmul.f32 1.442695, %v573_v60  ;;  %v658_v41 = vadd.s32 %v650_v34, %v636_v36  ;;  %v659_v43 = vadd.s32 %v651_v37, %v636_v36  ;;  %v662_v46 = vadd.s32 %v654_v40, %v636_v36 }
 0x17e   : > { %v648_v47 = vadd.s32 %v641_v32, %v633_v35  ;;  %v649_v49 = vadd.s32 %v641_v32, %v634_v39  ;;  %v652_v50 = vmul.u32 30, %v644_v42  ;;  %v663_v52 = vadd.s32 %v655_v44, %v636_v36 }
 0x17f   : > { %1228 = vpow2.f32 %v588_v62  ;;  %v1345_v0 = vpop.eup %1216  ;;  %v666_v48 = vadd.s32 42, %v658_v41  ;;  %v667_v51 = vadd.s32 42, %v659_v43  ;;  %v653_v53 = vmul.u32 30, %v645_v45 }
 0x180   : > { %1230 = vpow2.f32 %v586_v63  ;;  %v593_v1 = vsel %vm540_vm1, %v1345_v0, 0.0  ;;  %v1349_v2 = vpop.eup %1218  ;;  %v670_v54 = vadd.s32 42, %v662_v46  ;;  %v656_v55 = vmul.u32 30, %v648_v47 }
 0x181   : > { %594 = vadd.xlane.f32.xlu1 %v593_v1  ;;  %v605_v4 = vsel %vm540_vm1, %v1349_v2, 0.0  ;;  %v674_v56 = vshrl.u32 %v666_v48, 16  ;;  %v657_v57 = vmul.u32 30, %v649_v49  ;;  %v660_v58 = vadd.s32 %v652_v50, %v636_v36 }
 0x182   : > { %v675_v59 = vshrl.u32 %v667_v51, 16  ;;  %v671_v60 = vadd.s32 42, %v663_v52  ;;  %v661_v61 = vadd.s32 %v653_v53, %v636_v36  ;;  %v678_v62 = vshrl.u32 %v670_v54, 16 }
 0x183   : > { %v1351_v3 = vpop.eup %1220  ;;  %v664_v63 = vadd.s32 %v656_v55, %v636_v36  ;;  %v682_v1 = vxor.u32 %v674_v56, %v666_v48 }
 0x184   : > { %v590_v5 = vsel %vm540_vm1, %v1351_v3, 0.0  ;;  %v1357_v6 = vpop.eup %1222 }
 0x185   : > { %606 = vadd.xlane.f32.xlu1 %v605_v4  ;;  %591 = vadd.xlane.f32.xlu0 %v590_v5  ;;  %v602_v9 = vsel %vm540_vm1, %v1357_v6, 0.0  ;;  %v665_v4 = vadd.s32 %v657_v57, %v636_v36  ;;  %v668_v5 = vadd.s32 42, %v660_v58  ;;  %v690_v16 = vmul.u32 2146121005, %v682_v1 }
 0x187   : > { %v673_v17 = vadd.s32 42, %v665_v4  ;;  %v676_v18 = vshrl.u32 %v668_v5, 16  ;;  %v698_v24 = vshrl.u32 %v690_v16, 15 }
 0x188   : > { %v1359_v7 = vpop.eup %1224 }
 0x189   : > { %v599_v8 = vsel %vm550_vm2, %v1359_v7, 0.0  ;;  %v1365_v10 = vpop.eup %1226  ;;  %603 = vadd.xlane.f32.xlu0 %v602_v9  ;;  %v679_v9 = vshrl.u32 %v671_v60, 16  ;;  %v681_v25 = vshrl.u32 %v673_v17, 16  ;;  %v684_v26 = vxor.u32 %v676_v18, %v668_v5 }
 0x18a   : > { %600 = vadd.xlane.f32.xlu1 %v599_v8  ;;  %v596_v13 = vsel %vm540_vm1, %v1365_v10, 0.0  ;;  %v683_v8 = vxor.u32 %v675_v59, %v667_v51  ;;  %v706_v33 = vxor.u32 %v698_v24, %v690_v16 }
 0x18b   : > { %v687_v20 = vxor.u32 %v679_v9, %v671_v60  ;;  %v689_v34 = vxor.u32 %v681_v25, %v673_v17  ;;  %v692_v35 = vmul.u32 2146121005, %v684_v26 }
 0x18c   : > { %v1367_v11 = vpop.eup %1228  ;;  %v691_v19 = vmul.u32 2146121005, %v683_v8  ;;  %v714_v43 = vmul.u32 2221713035, %v706_v33 }
 0x18d   : > { %v611_v12 = vsel %vm550_vm2, %v1367_v11, 0.0  ;;  %v1373_v14 = vpop.eup %1230  ;;  %597 = vadd.xlane.f32.xlu0 %v596_v13  ;;  %v686_v13 = vxor.u32 %v678_v62, %v670_v54  ;;  %v695_v28 = vmul.u32 2146121005, %v687_v20  ;;  %v697_v44 = vmul.u32 2146121005, %v689_v34 }
 0x18e   : > { %612 = vadd.xlane.f32.xlu1 %v611_v12  ;;  %v608_v15 = vsel %vm540_vm1, %v1373_v14, 0.0  ;;  %v669_v12 = vadd.s32 42, %v661_v61  ;;  %v699_v27 = vshrl.u32 %v691_v19, 15  ;;  %v700_v45 = vshrl.u32 %v692_v35, 15 }
 0x18f   : > { %v694_v22 = vmul.u32 2146121005, %v686_v13  ;;  %v703_v37 = vshrl.u32 %v695_v28, 15  ;;  %v722_v53 = vshrl.u32 %v714_v43, 16  ;;  %v705_v54 = vshrl.u32 %v697_v44, 15 }
 0x190   : > { %v677_v21 = vshrl.u32 %v669_v12, 16  ;;  %v707_v36 = vxor.u32 %v699_v27, %v691_v19  ;;  %v708_v55 = vxor.u32 %v700_v45, %v692_v35 }
 0x191   : > { %609 = vadd.xlane.f32.xlu0 %v608_v15  ;;  %v672_v15 = vadd.s32 42, %v664_v63  ;;  %v702_v31 = vshrl.u32 %v694_v22, 15  ;;  %v711_v47 = vxor.u32 %v703_v37, %v695_v28  ;;  %v730_v63 = vxor.u32 %v722_v53, %v714_v43 }
 0x192   : > { %v685_v29 = vxor.u32 %v677_v21, %v669_v12  ;;  %v715_v46 = vmul.u32 2221713035, %v707_v36  ;;  %v713_v1 = vxor.u32 %v705_v54, %v697_v44  ;;  %v716_v4 = vmul.u32 2221713035, %v708_v55  ;;  %v310_v55 = vld [vmem:[%s272_s5 + $0x28] sm:$0xff] }
 0x193   : > { %v680_v23 = vshrl.u32 %v672_v15, 16  ;;  %v710_v41 = vxor.u32 %v702_v31, %v694_v22  ;;  %v719_v57 = vmul.u32 2221713035, %v711_v47  ;;  %vm738_vm4 = vcmp.lt.u32.totalorder %v730_v63, 858993459 }
 0x194   : > { %v693_v38 = vmul.u32 2146121005, %v685_v29  ;;  %v723_v56 = vshrl.u32 %v715_v46, 16  ;;  %v721_v17 = vmul.u32 2221713035, %v713_v1  ;;  %v724_v18 = vshrl.u32 %v716_v4, 16 }
 0x195   : > { %v688_v32 = vxor.u32 %v680_v23, %v672_v15  ;;  %v718_v51 = vmul.u32 2221713035, %v710_v41  ;;  %v727_v8 = vshrl.u32 %v719_v57, 16  ;;  %v746_v25 = vsel %vm738_vm4, %v1351_v3, 0.0  ;;  %v307_v1 = vld [vmem:[%s272_s5 + $0x10] sm:$0xff] }
 0x196   : > { %v701_v48 = vshrl.u32 %v693_v38, 15  ;;  %v731_v5 = vxor.u32 %v723_v56, %v715_v46  ;;  %v729_v29 = vshrl.u32 %v721_v17, 16 }
 0x197   : > { %v696_v42 = vmul.u32 2146121005, %v688_v32  ;;  %v726_v61 = vshrl.u32 %v718_v51, 16  ;;  %v735_v21 = vxor.u32 %v727_v8, %v719_v57 }
 0x198   : > { %v709_v58 = vxor.u32 %v701_v48, %v693_v38  ;;  %vm739_vm5 = vcmp.lt.u32.totalorder %v731_v5, 858993459  ;;  %v312_v5 = vld [vmem:[%s272_s5 + $0x38] sm:$0x3f] }
 0x199   : > { %v704_v52 = vshrl.u32 %v696_v42, 15  ;;  %v734_v15 = vxor.u32 %v726_v61, %v718_v51  ;;  %v747_v27 = vsel %vm739_vm5, %v1345_v0, 0.0  ;;  %vm743_vm7 = vcmp.lt.u32.totalorder %v735_v21, 858993459  ;;  %v308_v61 = vld [vmem:[%s272_s5 + $0x18] sm:$0x3f] }
 0x19a   : > { %v717_v9 = vmul.u32 2221713035, %v709_v58  ;;  %v751_v0 = vsel %vm743_vm7, %v1349_v2, 0.0  ;;  %v309_v58 = vld [vmem:[%s272_s5 + $0x20] sm:$0xff] }
 0x19b   : > { %v712_v62 = vxor.u32 %v704_v52, %v696_v42  ;;  %vm742_vm6 = vcmp.lt.u32.totalorder %v734_v15, 858993459 }
 0x19c   : > { %v725_v22 = vshrl.u32 %v717_v9, 16  ;;  %v750_v37 = vsel %vm742_vm6, %v1357_v6, 0.0 }
 0x19d   : > { %v720_v16 = vmul.u32 2221713035, %v712_v62 }
 0x19e   : > { %v733_v34 = vxor.u32 %v725_v22, %v717_v9 }
 0x19f   : > { %v728_v26 = vshrl.u32 %v720_v16, 16 }
 0x1a0   : > { %vm741_vm9 = vcmp.lt.u32.totalorder %v733_v34, 858993459 }
 0x1a1   : > { %v736_v38 = vxor.u32 %v728_v26, %v720_v16  ;;  %v749_v46 = vsel %vm741_vm9, %v1359_v7, 0.0  ;;  %v306_v7 = vld [vmem:[%s272_s5 + $0x8] sm:$0xff] }
 0x1a3   : > { %vm744_vm10 = vcmp.lt.u32.totalorder %v736_v38, 858993459 }
 0x20a   : > { %v595_v30 = vpop.xlane.xlu1 %594 }
 0x20b   : > { %1232 = vrcp.f32 %v595_v30  ;;  %v732_v30 = vxor.u32 %v724_v18, %v716_v4 }
 0x20d   : > { %vm740_vm8 = vcmp.lt.u32.totalorder %v732_v30, 858993459 }
 0x20e   : > { %v607_v39 = vpop.xlane.xlu1 %606  ;;  %v592_v40 = vpop.xlane.xlu0 %591  ;;  %v748_v45 = vsel %vm740_vm8, %v1365_v10, 0.0 }
 0x20f   : > { %1234 = vrcp.f32 %v592_v40  ;;  %v737_v40 = vxor.u32 %v729_v29, %v721_v17 }
 0x210   : > { %1236 = vrcp.f32 %v607_v39 }
 0x211   : > { %vm745_vm11 = vcmp.lt.u32.totalorder %v737_v40, 858993459 }
 0x212   : > { %v604_v50 = vpop.xlane.xlu0 %603  ;;  %v753_v51 = vsel %vm745_vm11, %v1367_v11, 0.0 }
 0x213   : > { %v601_v49 = vpop.xlane.xlu1 %600  ;;  %1238 = vrcp.f32 %v604_v50  ;;  %v752_v50 = vsel %vm744_vm10, %v1373_v14, 0.0  ;;  %v305_v14 = vld [vmem:[%s272_s5] sm:$0xff] }
 0x214   : > { %1240 = vrcp.f32 %v601_v49 }
 0x216   : > { %v598_v60 = vpop.xlane.xlu0 %597 }
 0x217   : > { %v613_v59 = vpop.xlane.xlu1 %612 }
 0x218   : > { %1242 = vrcp.f32 %v613_v59  ;;  %v1233_v12 = vpop.eup %1232 }
 0x219   : > { %1244 = vrcp.f32 %v598_v60  ;;  %v617_v20 = vmul.f32 5.0, %v1233_v12 }
 0x21a   : > { %v610_v13 = vpop.xlane.xlu0 %609 }
 0x21b   : > { %1246 = vrcp.f32 %v610_v13  ;;  %v755_v32 = vmul.f32 %v747_v27, %v617_v20  ;;  %v311_v13 = vld [vmem:[%s272_s5 + $0x30] sm:$0xff] }
 0x21c   : > { %v1235_v19 = vpop.eup %1234 }
 0x21d   : > { %v1237_v23 = vpop.eup %1236  ;;  %v615_v24 = vmul.f32 5.0, %v1235_v19 }
 0x21e   : > { %v625_v33 = vmul.f32 5.0, %v1237_v23 }
 0x21f   : > { %v754_v28 = vmul.f32 %v746_v25, %v615_v24 }
 0x220   : > { %v1239_v31 = vpop.eup %1238  ;;  %v759_v42 = vmul.f32 %v751_v0, %v625_v33 }
 0x221   : > { %v1241_v35 = vpop.eup %1240  ;;  %v623_v36 = vmul.f32 5.0, %v1239_v31  ;;  %1188 = vmatprep.mubr.msk.f32.mxu0 %vm540_vm1, %v754_v28 }
 0x222   : > { %1189 = vmatmul.mubr.msk.f32.vlgmr.msra.gmra.mxu0 %vm540_vm1, %v755_v32  ;;  %v621_v43 = vmul.f32 5.0, %v1241_v35 }
 0x223   : > { %v758_v39 = vmul.f32 %v750_v37, %v623_v36 }
 0x224   : > { %v757_v48 = vmul.f32 %v749_v46, %v621_v43 }
 0x225   : > { %v1243_v3 = vpop.eup %1242  ;;  %1202 = vmatprep.mubr.msk.f32.mxu1 %vm540_vm1, %v758_v39 }
 0x226   : > { %v1245_v41 = vpop.eup %1244  ;;  %1203 = vmatmul.mubr.msk.f32.vlgmr.msra.gmra.mxu1 %vm540_vm1, %v759_v42  ;;  %v629_v2 = vmul.f32 5.0, %v1243_v3 }
 0x227   : > { %v619_v44 = vmul.f32 5.0, %v1245_v41 }
 0x228   : > { %v1247_v6 = vpop.eup %1246  ;;  %v761_v52 = vmul.f32 %v753_v51, %v629_v2 }
 0x229   : > { %v756_v47 = vmul.f32 %v748_v45, %v619_v44  ;;  %v627_v49 = vmul.f32 5.0, %v1247_v6 }
 0x22b   : > { %1191 = vmatprep.mubr.msk.f32.mxu0 %vm540_vm1, %v756_v47  ;;  %v760_v10 = vmul.f32 %v752_v50, %v627_v49 }
 0x22c   : > { %1192 = vmatmul.mubr.msk.f32.gmra.mxu0 %vm540_vm1, %v757_v48 }
 0x22d   : > { %1205 = vmatprep.mubr.msk.f32.mxu1 %vm540_vm1, %v760_v10 }
 0x22e   : > { %1206 = vmatmul.mubr.msk.f32.gmra.mxu1 %vm540_vm1, %v761_v52 }
 0x2e2   : > { %v1190_v11 = vpop.f32.mrf.mxu0 }
 0x2e3   : > { %v850_v53 = vadd.f32 %v1190_v11, %v306_v7 }
 0x2e4   : > { %v844_v54 = vpop.f32.mrf.mxu0 }
 0x2e5   : > { %964 = vst.msk [vmem:[%s1406_s8 + $0x8] sm:$0xff] %vm313_vm0, %v850_v53  ;;  %v845_v56 = vadd.f32 %v844_v54, %v305_v14 }
 0x2e6   : > { %v1204_v57 = vpop.f32.mrf.mxu1 }
 0x2e7   : > { %963 = vst.msk [vmem:[%s1406_s8] sm:$0xff] %vm313_vm0, %v845_v56  ;;  %v950_v59 = vadd.f32 %v1204_v57, %v310_v55 }
 0x2e8   : > { %v944_v60 = vpop.f32.mrf.mxu1 }
 0x2e9   : > { %969 = vst.msk [vmem:[%s1406_s8 + $0x28] sm:$0xff] %vm313_vm0, %v950_v59  ;;  %v945_v62 = vadd.f32 %v944_v60, %v309_v58 }
 0x2eb   : > { %968 = vst.msk [vmem:[%s1406_s8 + $0x20] sm:$0xff] %vm313_vm0, %v945_v62 }
 0x2ec   : > { %v1193_v63 = vpop.f32.mrf.mxu0 }
 0x2ed   : > { %v860_v4 = vadd.f32 %v1193_v63, %v308_v61 }
 0x2ee   : > { %v854_v8 = vpop.f32.mrf.mxu0  ;;  %v1207_v12 = vpop.f32.mrf.mxu1 }
 0x2ef   : > { %967 = vst.msk [vmem:[%s1406_s8 + $0x18] sm:$0x3f] %vm966_vm12, %v860_v4  ;;  %v855_v9 = vadd.f32 %v854_v8, %v307_v1  ;;  %v960_v15 = vadd.f32 %v1207_v12, %v312_v5 }
 0x2f0   : > { %v954_v16 = vpop.f32.mrf.mxu1 }
 0x2f1   : > { %965 = vst.msk [vmem:[%s1406_s8 + $0x10] sm:$0xff] %vm313_vm0, %v855_v9  ;;  %v955_v17 = vadd.f32 %v954_v16, %v311_v13 }
 0x2f2   : > { %971 = vst.msk [vmem:[%s1406_s8 + $0x38] sm:$0x3f] %vm966_vm12, %v960_v15 }
 0x2f3   : > { %970 = vst.msk [vmem:[%s1406_s8 + $0x30] sm:$0xff] %vm313_vm0, %v955_v17 }
 0x2f4 PF: > { %s14_s15 = sadd.s32 1, %s1254_s15  }
 0x2f5   : > { %p11_p4 = scmp.ge.s32.totalorder %s14_s15, 4  }
 0x2f7   :  { %13 = sbr.rel (!%p11_p4) target bundleno = 1 (0x1), region = 75 }

</bundles_post_ra>
